<compile_context>
chip_gen: v7x
topology: tpu7x:2x2x1
jax: 0.10.0
libtpu: 0.0.40
codegen_flags: <defaults>
</compile_context>

<pallas_src>
import jax
import jax.numpy as jnp
from jax.experimental import pallas as pl
from jax.experimental.pallas import tpu as pltpu


_SUBLANE_BY_ITEMSIZE = {4: 8, 2: 16, 1: 32}
_LANE_CANDIDATES = (1024, 512, 256, 128)


def _round_up(x: int, m: int) -> int:
    return ((x + m - 1) // m) * m


def _make_lambda_kernel(fun):
    """Build a Pallas kernel applying `fun` elementwise to its VMEM tile."""

    def kernel(x_ref, o_ref):
        o_ref[...] = fun(x_ref[...]).astype(o_ref.dtype)

    return kernel


class PallasLambda:
    """Pallas-backed equivalent of torch Lambda(fun) for elementwise `fun`."""

    def __init__(self, fun, *, target_tile_bytes: int = 2 << 20,
                 min_pallas_elems: int = 1 << 20):
        self.fun = fun
        self.target_tile_bytes = int(target_tile_bytes)
        self.min_pallas_elems = int(min_pallas_elems)
        self._kernel = _make_lambda_kernel(fun)

    def __call__(self, x):
        n = x.size
        # Small-input bypass: fixed pallas_call + glue overhead dominates far
        # below ~1M elements.
        if n == 0 or n < self.min_pallas_elems:
            return self.fun(x)

        in_dtype = jnp.dtype(x.dtype)
        out_dtype = jax.eval_shape(
            self.fun, jax.ShapeDtypeStruct((1,), in_dtype)).dtype

        itemsize = in_dtype.itemsize
        sublane = _SUBLANE_BY_ITEMSIZE.get(itemsize, 8)

        # Widest lane-dense width that divides n exactly (no pad); fall back
        # to 128 with a padded ragged tail.
        lanes = next((c for c in _LANE_CANDIDATES if n % c == 0), 128)
        rows = pl.cdiv(n, lanes)

        # ~target_tile_bytes per tile, rounded to the packed-sublane multiple.
        target_rows = max(
            sublane,
            (self.target_tile_bytes // (lanes * itemsize)) // sublane * sublane)
        tile_rows = min(target_rows, _round_up(rows, sublane))

        grid_steps = pl.cdiv(rows, tile_rows)
        rows_padded = grid_steps * tile_rows
        n_padded = rows_padded * lanes

        x_flat = x.reshape(-1)
        if n_padded != n:
            # Edge-pad so fun(pad) stays finite; padded tail is discarded below.
            x_flat = jnp.pad(x_flat, (0, n_padded - n), mode="edge")
        x2d = x_flat.reshape(rows_padded, lanes)

        out2d = pl.pallas_call(
            self._kernel,
            out_shape=jax.ShapeDtypeStruct((rows_padded, lanes), out_dtype),
            grid=(grid_steps,),
            in_specs=[pl.BlockSpec((tile_rows, lanes), lambda i: (i, 0))],
            out_specs=pl.BlockSpec((tile_rows, lanes), lambda i: (i, 0)),
            compiler_params=pltpu.CompilerParams(
                dimension_semantics=("parallel",)),
        )(x2d)

        out_flat = out2d.reshape(-1)
        if n_padded != n:
            out_flat = out_flat[:n]
        return out_flat.reshape(x.shape)


if __name__ == "__main__":
    key = jax.random.PRNGKey(0)
    k1, k2 = jax.random.split(key)

    # Small NCHW input consistent with typical Lambda usage on conv features.
    x = jax.random.normal(k1, (2, 4, 16, 16), dtype=jnp.float32)
    ref = jnp.tanh(x)

    # 1) Pallas path forced (min_pallas_elems=0): single-tile, padded tail.
    lam = PallasLambda(jnp.tanh, min_pallas_elems=0)
    y = jax.block_until_ready(lam(x))
    assert y.shape == x.shape and y.dtype == ref.dtype
    assert jnp.allclose(y, ref, atol=1e-6, rtol=1e-6)

    # 2) Multi-tile parallel grid path (small target tile -> 4 grid steps).
    x2 = jax.random.normal(k2, (2, 4, 64, 64), dtype=jnp.float32)
    lam2 = PallasLambda(jnp.exp, min_pallas_elems=0, target_tile_bytes=32 * 1024)
    y2 = jax.block_until_ready(lam2(x2))
    assert jnp.allclose(y2, jnp.exp(x2), atol=1e-5, rtol=1e-5)

    # 3) Small-input bypass (default threshold): identical semantics, no kernel.
    lam_bypass = PallasLambda(jnp.tanh)
    y3 = jax.block_until_ready(lam_bypass(x))
    assert jnp.allclose(y3, ref, atol=1e-6, rtol=1e-6)

    print("KERNEL_OK")
</pallas_src>

<mosaic_0001>
module attributes {stable_mosaic.version = 11 : i64} {
  func.func @kernel(%arg0: i32, %arg1: memref<8x1024xf32, #tpu.memory_space<vmem>>, %arg2: memref<8x1024xf32, #tpu.memory_space<vmem>>) attributes {dimension_semantics = [#tpu.dimension_semantics<parallel>], iteration_bounds = array<i64: 1>, scalar_prefetch = 0 : i64, scratch_operands = 0 : i64, tpu.core_type = #tpu.core_type<tc>, window_params = [{transform_indices = @transform_0, window_bounds = array<i64: 8, 1024>}, {transform_indices = @transform_1, window_bounds = array<i64: 8, 1024>}]} {
    %c0 = arith.constant 0 : index
    %c0_0 = arith.constant 0 : index
    %0 = vector.load %arg1[%c0, %c0_0] : memref<8x1024xf32, #tpu.memory_space<vmem>>, vector<8x1024xf32>
    %1 = math.tanh %0 : vector<8x1024xf32>
    %c0_1 = arith.constant 0 : index
    %c0_2 = arith.constant 0 : index
    %2 = vector.load %arg2[%c0_1, %c0_2] : memref<8x1024xf32, #tpu.memory_space<vmem>>, vector<8x1024xf32>
    tpu.vector_store %arg2[%c0_1, %c0_2], %1 {strides = array<i32>} : memref<8x1024xf32, #tpu.memory_space<vmem>>, vector<8x1024xf32>,
    return
  }
  func.func @transform_0(%arg0: i32) -> (i32, i32) {
    %c0_i32 = arith.constant 0 : i32
    %c0_i32_0 = arith.constant 0 : i32
    return %arg0, %c0_i32 : i32, i32
  }
  func.func @transform_1(%arg0: i32) -> (i32, i32) {
    %c0_i32 = arith.constant 0 : i32
    %c0_i32_0 = arith.constant 0 : i32
    return %arg0, %c0_i32 : i32, i32
  }
}

</mosaic_0001>

<bundles_post_ra>
// kernel: tpu_custom_call.1
= control target key start
LH: loop header
LB: loop body
LE: loop exit
PB: predicated region body
PF: predicated region fallthrough
CT: control target
= control target key end

     0   :  { %6 = vsyncpa [#allocation3], 0  ;;  %s162_s0 = inlined_call_operand.hbm [shape: f32[8,1024], index: 0, kind: input, shape index: {}]   ;;  %s163_s1 = inlined_call_operand.hbm [shape: f32[8,1024], index: 1, kind: output, shape index: {}]  }
   0x1   :  { %7 = vsyncpa [#allocation4], 0  ;;  %s126_s6 = smov [#allocation2]   ;;  %s78_s10 = scalar_lea.hbm %s162_s0, 1024 }
   0x2   :  { %s14_s7 = sshll.u32 %s126_s6, 4  ;;  %p79_p0 = scmp.ne.s32.totalorder %s162_s0, %s78_s10  ;;  %s15_s7 = int_to_ptr.vmem [resolvable:$true] %s14_s7 }
   0x3   :  { %p82_p1 = scmp.lt.u32.totalorder %s78_s10, %s162_s0 }
   0x5   :  { %p84_p2 = pnand %p82_p1, %p79_p0 }
   0x7   :  { %87 = shalt.err (!%p84_p2)
}
   0x8   :  { %s88_s15 = scalar_lea.vmem %s15_s7, 1024  ;;  %p93_p4 = scmp.lt.s32.totalorder %s15_s7, %s15_s7 }
   0x9   :  { %p89_p3 = scmp.ne.s32.totalorder %s15_s7, %s88_s15  ;;  %p94_p5 = scmp.lt.s32.totalorder %s88_s15, %s88_s15 }
   0xb   :  { %p95_p6 = por %p94_p5, %p93_p4 }
   0xd   :  { %p96_p7 = pnand %p95_p6, %p89_p3 }
   0xf   :  { %99 = shalt.err (!%p96_p7)
}
  0x10   :  { %17 = dma.hbm_to_vmem [thread:$0]  %s162_s0, 1024, %s15_s7, [#allocation3]  }
  0x11   :  { %122 = dma.done.wait [#allocation3], 1024  }
  0x12   :  { %123 = vsyncadd [#allocation3], 4294966272  ;;  %v21_v0 = vld [vmem:[#allocation2] sm:$0xff]  ;;  %v22_v1 = vld [vmem:[#allocation2 + $0x8] sm:$0xff]  ;;  %s127_s0 = smov [#allocation5]  }
  0x13   :  { %v23_v2 = vld [vmem:[#allocation2 + $0x10] sm:$0xff]  ;;  %62 = vtanh.f32 %v21_v0  ;;  %v24_v3 = vld [vmem:[#allocation2 + $0x18] sm:$0xff]  ;;  %v25_v4 = vld [vmem:[#allocation2 + $0x20] sm:$0xff]  ;;  %s51_s18 = sshll.u32 %s127_s0, 4  ;;  %s52_s18 = int_to_ptr.vmem [resolvable:$true] %s51_s18 }
  0x14   :  { %64 = vtanh.f32 %v22_v1  ;;  %v26_v5 = vld [vmem:[#allocation2 + $0x28] sm:$0xff]  ;;  %v27_v6 = vld [vmem:[#allocation2 + $0x30] sm:$0xff]  ;;  %v28_v7 = vld [vmem:[#allocation2 + $0x38] sm:$0xff]  ;;  %s100_s19 = scalar_lea.vmem %s52_s18, 1024  ;;  %p105_p9 = scmp.lt.s32.totalorder %s52_s18, %s52_s18 }
  0x15   :  { %66 = vtanh.f32 %v23_v2  ;;  %p101_p8 = scmp.ne.s32.totalorder %s52_s18, %s100_s19  ;;  %p106_p10 = scmp.lt.s32.totalorder %s100_s19, %s100_s19 }
  0x16   :  { %68 = vtanh.f32 %v24_v3 }
  0x17   :  { %70 = vtanh.f32 %v25_v4  ;;  %p107_p11 = por %p106_p10, %p105_p9 }
  0x18   :  { %72 = vtanh.f32 %v26_v5 }
  0x19   :  { %74 = vtanh.f32 %v27_v6  ;;  %p108_p12 = pnand %p107_p11, %p101_p8 }
  0x1a   :  { %76 = vtanh.f32 %v28_v7 }
  0x1d   :  { %v63_v8 = vpop.eup %62 }
  0x1e   :  { %v65_v9 = vpop.eup %64  ;;  %37 = vst [vmem:[#allocation5] sm:$0xff] %v63_v8 }
  0x1f   :  { %v67_v10 = vpop.eup %66  ;;  %38 = vst [vmem:[#allocation5 + $0x8] sm:$0xff] %v65_v9 }
  0x20   :  { %v69_v11 = vpop.eup %68  ;;  %39 = vst [vmem:[#allocation5 + $0x10] sm:$0xff] %v67_v10 }
  0x21   :  { %v71_v12 = vpop.eup %70  ;;  %40 = vst [vmem:[#allocation5 + $0x18] sm:$0xff] %v69_v11 }
  0x22   :  { %v73_v13 = vpop.eup %72  ;;  %41 = vst [vmem:[#allocation5 + $0x20] sm:$0xff] %v71_v12 }
  0x23   :  { %v75_v14 = vpop.eup %74  ;;  %42 = vst [vmem:[#allocation5 + $0x28] sm:$0xff] %v73_v13 }
  0x24   :  { %v77_v15 = vpop.eup %76  ;;  %43 = vst [vmem:[#allocation5 + $0x30] sm:$0xff] %v75_v14 }
  0x25   :  { %44 = vst [vmem:[#allocation5 + $0x38] sm:$0xff] %v77_v15 }
  0x26   :  { %111 = shalt.err (!%p108_p12)
}
  0x27   :  { %s112_s22 = scalar_lea.hbm %s163_s1, 1024 }
  0x28   :  { %p113_p13 = scmp.ne.s32.totalorder %s163_s1, %s112_s22  ;;  %p116_p0 = scmp.lt.u32.totalorder %s112_s22, %s163_s1 }
  0x2a   :  { %p118_p1 = pnand %p116_p0, %p113_p13 }
  0x2c   :  { %121 = shalt.err (!%p118_p1)
}
  0x2d   :  { %54 = dma.vmem_to_hbm [thread:$0]  %s52_s18, 1024, %s163_s1, [#allocation4]  }
  0x2e   :  { %124 = dma.done.wait [#allocation4], 1024  }
  0x2f   :  { %125 = vsyncadd [#allocation4], 4294966272 }
  0x30   :  { %58 = vsyncpa [#allocation3], 1 }
  0x31   :  { %59 = vsyncpa [#allocation4], 1 }

</bundles_post_ra>
